<compile_context>
chip_gen: v5e
topology: v5e:2x2
jax: 0.10.0
libtpu: 0.0.40
codegen_flags: <defaults>
</compile_context>

<pallas_src>
import jax
import jax.numpy as jnp
from jax.experimental import pallas as pl
from jax.experimental.pallas import tpu as pltpu


_TARGET_TILE_BYTES = 2 * 1024 * 1024   # ~2 MiB per (TS, D) tile
_SMALL_BYTES = 512 * 1024              # below this, single whole-array call


def _sublane_multiple(dtype) -> int:
    # Packed sublane tiling: f32 -> 8 rows, bf16 -> 16, int8/fp8 -> 32.
    return max(8, 32 // jnp.dtype(dtype).itemsize)


def _pick_s_tile(S, D, dtype) -> int:
    itemsize = jnp.dtype(dtype).itemsize
    sub = _sublane_multiple(dtype)
    rows = _TARGET_TILE_BYTES // max(1, D * itemsize)
    rows = max(sub, (rows // sub) * sub)
    return S if rows >= S else rows


def _vector_add_tile_kernel(x_ref, v_ref, o_ref):
    # x_ref / o_ref: (TS, D) tile (batch dim squeezed); v_ref: (1, D).
    # Sublane-broadcast add on the VPU; fully hidden under the read+write DMA.
    o_ref[...] = (x_ref[...] + v_ref[...]).astype(o_ref.dtype)


def _vector_add_whole_kernel(x_ref, v_ref, o_ref):
    # Small-input path: whole arrays resident in VMEM, no grid.
    o_ref[...] = (x_ref[...] + v_ref[...][:, None, :]).astype(o_ref.dtype)


def vector_adversary_forward(x, vector, *, s_tile=None, donate_x=False):
    """VectorAdversary.forward: x + vector[:, None, :].

    x: (B, S, D), vector: (B, D) -> (B, S, D).
    """
    B, S, D = x.shape
    assert vector.shape == (B, D), (vector.shape, (B, D))

    out_dtype = jnp.result_type(x.dtype, vector.dtype)
    out_shape = jax.ShapeDtypeStruct((B, S, D), out_dtype)

    # Cheap latency win when the caller can donate x (only when buffer-compatible).
    io_aliases = {0: 0} if (donate_x and out_dtype == x.dtype) else {}

    # Tiny inputs: the ~0.35 us/grid-step + pipelining overhead dominates at a
    # few KiB of data, so use a single no-grid call with whole arrays in VMEM.
    if s_tile is None and x.size * jnp.dtype(x.dtype).itemsize <= _SMALL_BYTES:
        return pl.pallas_call(
            _vector_add_whole_kernel,
            out_shape=out_shape,
            input_output_aliases=io_aliases,
        )(x, vector)

    # HBM-bound tiled path: ~2 MiB (TS, D) blocks, double-buffered in + out
    # (~4 tiles) stays well under the scoped-VMEM limit on v5e/v6e/v7x.
    ts = _pick_s_tile(S, D, x.dtype) if s_tile is None else min(int(s_tile), S)
    grid = (B, pl.cdiv(S, ts))

    return pl.pallas_call(
        _vector_add_tile_kernel,
        out_shape=out_shape,
        grid=grid,
        in_specs=[
            # Squeeze the size-1 batch dim out of the kernel view -> (TS, D).
            pl.BlockSpec((pl.Squeezed(), ts, D), lambda b, s: (b, s, 0)),
            # Per-batch vector, (1, D): free sublane broadcast in the add.
            pl.BlockSpec((1, D), lambda b, s: (b, 0)),
        ],
        out_specs=pl.BlockSpec((pl.Squeezed(), ts, D), lambda b, s: (b, s, 0)),
        input_output_aliases=io_aliases,
        compiler_params=pltpu.CompilerParams(
            # Both axes independent; lets v7x's two TensorCores share the grid.
            dimension_semantics=("parallel", "parallel"),
            # Headroom for multi-MiB tiles (raises v5e's 16 MiB default; still
            # well within v7x's 64 MiB physical VMEM).
            vmem_limit_bytes=32 * 1024 * 1024,
        ),
    )(x, vector)


if __name__ == "__main__":
    key = jax.random.PRNGKey(0)
    kx, kv, kx2, kv2 = jax.random.split(key, 4)

    # Case 1: module-scale small shape (batch=2, seq=8, dim=128)
    # -> whole-array (no-grid) path.
    B, S, D = 2, 8, 128
    x = jax.random.normal(kx, (B, S, D), dtype=jnp.float32)
    # PyTorch initializes `vector` to zeros; use a small non-zero perturbation
    # here so the add is observable.
    vector = 0.01 * jax.random.normal(kv, (B, D), dtype=jnp.float32)

    out = jax.block_until_ready(vector_adversary_forward(x, vector))
    ref = x + vector[:, None, :]
    assert out.shape == ref.shape and out.dtype == ref.dtype
    assert jnp.allclose(out, ref, atol=1e-6, rtol=1e-6)

    # Case 2: exercise the tiled (grid) path with an explicit sequence tile.
    B2, S2, D2 = 2, 64, 128
    x2 = jax.random.normal(kx2, (B2, S2, D2), dtype=jnp.float32)
    vector2 = 0.01 * jax.random.normal(kv2, (B2, D2), dtype=jnp.float32)

    out2 = jax.block_until_ready(
        vector_adversary_forward(x2, vector2, s_tile=16)
    )
    ref2 = x2 + vector2[:, None, :]
    assert jnp.allclose(out2, ref2, atol=1e-6, rtol=1e-6)

    # TODO(synk): clip_attack() (L2-norm projection of the parameter) is a
    # training-time in-place update, not part of forward; not implemented here.
    print("KERNEL_OK")
</pallas_src>

<mosaic_0001>
module attributes {stable_mosaic.version = 11 : i64} {
  func.func @_vector_add_whole_kernel(%arg0: memref<2x8x128xf32, #tpu.memory_space<vmem>>, %arg1: memref<2x128xf32, #tpu.memory_space<vmem>>, %arg2: memref<2x8x128xf32, #tpu.memory_space<vmem>>) attributes {dimension_semantics = [], scalar_prefetch = 0 : i64, scratch_operands = 0 : i64, tpu.core_type = #tpu.core_type<tc>} {
    %c0 = arith.constant 0 : index
    %c0_0 = arith.constant 0 : index
    %c0_1 = arith.constant 0 : index
    %0 = vector.load %arg0[%c0, %c0_0, %c0_1] : memref<2x8x128xf32, #tpu.memory_space<vmem>>, vector<2x8x128xf32>
    %c0_2 = arith.constant 0 : index
    %c0_3 = arith.constant 0 : index
    %1 = vector.load %arg1[%c0_2, %c0_3] : memref<2x128xf32, #tpu.memory_space<vmem>>, vector<2x128xf32>
    %2 = vector.shape_cast %1 : vector<2x128xf32> to vector<2x1x128xf32>
    %3 = vector.broadcast %2 : vector<2x1x128xf32> to vector<2x8x128xf32>
    %4 = arith.addf %0, %3 : vector<2x8x128xf32>
    %c0_4 = arith.constant 0 : index
    %c0_5 = arith.constant 0 : index
    %c0_6 = arith.constant 0 : index
    %5 = vector.load %arg2[%c0_4, %c0_5, %c0_6] : memref<2x8x128xf32, #tpu.memory_space<vmem>>, vector<2x8x128xf32>
    tpu.vector_store %arg2[%c0_4, %c0_5, %c0_6], %4 {strides = array<i32>} : memref<2x8x128xf32, #tpu.memory_space<vmem>>, vector<2x8x128xf32>,
    return
  }
}

</mosaic_0001>

<bundles_post_ra>
// kernel: tpu_custom_call.1
= control target key start
LH: loop header
LB: loop body
LE: loop exit
PB: predicated region body
PF: predicated region fallthrough
CT: control target
= control target key end

     0   :  { %7 = vsyncpa [#allocation3], 0  ;;  %s193_s0 = inlined_call_operand.hbm [shape: f32[2,8,128], index: 0, kind: input, shape index: {}]   ;;  %s194_s1 = inlined_call_operand.hbm [shape: f32[2,128], index: 1, kind: input, shape index: {}]   ;;  %s195_s2 = inlined_call_operand.hbm [shape: f32[2,8,128], index: 2, kind: output, shape index: {}]  }
   0x1   :  { %8 = vsyncpa [#allocation6], 0 }
   0x2   :  { %9 = vsyncpa [#allocation4], 0  ;;  %s14_s11 = sshll.u32 %s193_s0, 4  ;;  %s158_s12 = smov [#allocation2]   ;;  %s15_s11 = int_to_ptr.hbm [resolvable:$true] %s14_s11 }
   0x3   :  { %s16_s13 = sshll.u32 %s158_s12, 4  ;;  %s28_s16 = sshll.u32 %s194_s1, 4  ;;  %s17_s13 = int_to_ptr.vmem [resolvable:$true] %s16_s13  ;;  %s29_s16 = int_to_ptr.hbm [resolvable:$true] %s28_s16 }
   0x4   :  { %s159_s17 = smov 128   ;;  %s160_s18 = smov 8  }
   0x5   :  { %22 = dma.hbm_to_vmem [thread:$0]  %s15_s11, 256, %s17_s13, [#allocation3], %s159_s17, %s159_s17, %s160_s18  }
   0x6   :  { %s161_s19 = smov [#allocation5]  }
   0x7   :  { %s30_s20 = sshll.u32 %s161_s19, 4  ;;  %s31_s20 = int_to_ptr.vmem [resolvable:$true] %s30_s20 }
   0x8   :  { %33 = dma.hbm_to_vmem [thread:$0]  %s29_s16, 32, %s31_s20, [#allocation6]  }
   0x9   :  { %152 = dma.done.wait [#allocation3], 256  }
   0xa   :  { %153 = vsyncadd [#allocation3], 4294967040 }
   0xb   :  { %154 = dma.done.wait [#allocation6], 32  }
   0xc   :  { %155 = vsyncadd [#allocation6], 4294967264  ;;  %v42_v0 = vld [vmem:[#allocation2] sm:$0xff]  ;;  %v44_v1 = vld [vmem:[#allocation5] sm:$0x3]  ;;  %s162_s0 = smov [#allocation7]  }
   0xd   :  { %v47_v2 = vperm.slane %v44_v1, 0  ;;  %v46_v3 = vrot.slane %v44_v1, 1  ;;  %v43_v4 = vld [vmem:[#allocation2 + $0x8] sm:$0xff]  ;;  %s59_s1 = sshll.u32 %s162_s0, 4  ;;  %s61_s23 = sshll.u32 %s195_s2, 4  ;;  %s60_s1 = int_to_ptr.vmem [resolvable:$true] %s59_s1  ;;  %s62_s23 = int_to_ptr.hbm [resolvable:$true] %s61_s23 }
   0xf   :  { %v51_v5 = vadd.f32 %v47_v2, %v42_v0  ;;  %v48_v6 = vperm.slane %v46_v3, 0 }
  0x11   :  { %53 = vst [vmem:[#allocation7] sm:$0xff] %v51_v5  ;;  %v52_v7 = vadd.f32 %v48_v6, %v43_v4 }
  0x13   :  { %54 = vst [vmem:[#allocation7 + $0x8] sm:$0xff] %v52_v7 }
  0x14   :  { %67 = dma.vmem_to_hbm [thread:$0]  %s60_s1, 256, %s62_s23, [#allocation4], %s159_s17, %s159_s17, %s160_s18  }
  0x15   :  { %156 = dma.done.wait [#allocation4], 256  }
  0x16   :  { %157 = vsyncadd [#allocation4], 4294967040 }
  0x17   :  { %72 = vsyncpa [#allocation3], 1 }
  0x18   :  { %73 = vsyncpa [#allocation6], 1 }
  0x19   :  { %74 = vsyncpa [#allocation4], 1 }

</bundles_post_ra>
